<compile_context>
chip_gen: v5e
topology: v5e:2x2
jax: 0.10.0
libtpu: 0.0.40
codegen_flags: <defaults>
</compile_context>

<pallas_src>
import functools

import jax
import jax.numpy as jnp
import numpy as np
from jax.experimental import pallas as pl
from jax.experimental.pallas import tpu as pltpu


def _add_norm_kernel(seed_ref, x_ref, y_ref, gamma_ref, beta_ref, o_ref,
                     *, h_true: int, dropout_rate: float, training: bool, eps: float):
    x = x_ref[...].astype(jnp.float32)          # (TILE_R, H_pad)
    y = y_ref[...].astype(jnp.float32)          # (TILE_R, H_pad)

    if training and dropout_rate > 0.0:
        if dropout_rate >= 1.0:
            y = jnp.zeros_like(y)
        else:
            # Seed with (base_seed, tile_id): distinct, uncorrelated masks per row tile.
            pltpu.prng_seed(seed_ref[0], pl.program_id(0))
            bits = pltpu.bitcast(pltpu.prng_random_bits(y.shape), jnp.uint32)
            # Keep with prob (1-p): exact integer-threshold compare on raw bits.
            threshold = jnp.uint32(min(int(dropout_rate * (2 ** 32)), 2 ** 32 - 1))
            scale = jnp.float32(1.0 / (1.0 - dropout_rate))
            y = jnp.where(bits >= threshold, y * scale, jnp.float32(0.0))

    z = x + y                                   # dropout(Y) + X  (zero in padded lanes)

    # One-pass LayerNorm statistics over the true hidden size (padded lanes contribute 0).
    inv_h = jnp.float32(1.0 / h_true)
    mean = jnp.sum(z, axis=-1, keepdims=True) * inv_h
    mean_sq = jnp.sum(z * z, axis=-1, keepdims=True) * inv_h
    var = jnp.maximum(mean_sq - mean * mean, jnp.float32(0.0))
    inv = jax.lax.rsqrt(var + jnp.float32(eps))

    # gamma/beta are already f32 (1, H_pad); broadcast over the tile rows.
    out = (z - mean) * inv * gamma_ref[...] + beta_ref[...]
    o_ref[...] = out.astype(o_ref.dtype)


def _vmem_capacity_bytes() -> int:
    """Physical VMEM per TensorCore; conservative fallback if the query is unavailable."""
    try:
        return int(pltpu.get_tpu_info().vmem_capacity_bytes)
    except Exception:
        return 64 * 1024 * 1024   # safe on every generation (v7x minimum)


def _sublane_multiple(dtype) -> int:
    """Sublane packing for the HBM dtype: 8 for 4-byte, 16 for 2-byte, 32 for 1-byte."""
    itemsize = jnp.dtype(dtype).itemsize
    return max(8, 32 // max(itemsize, 1))


def _choose_tile_rows(rows: int, h_pad: int, dtype_bytes: int, *,
                      sublane: int, training_dropout: bool,
                      vmem_limit_bytes: int) -> int:
    """Largest row tile whose pipelined working set stays well under the scoped VMEM limit."""
    # Double-buffered DMA tiles: X, Y inputs + output.
    dma_bytes = h_pad * dtype_bytes * 3 * 2
    # Live f32-equivalent temporaries in the body (x, y, z, out [, dropout bits, select]).
    n_temps = 6 if training_dropout else 4
    if dtype_bytes < 4:
        n_temps += 2                              # upcast copies of X and Y
    bytes_per_row = dma_bytes + h_pad * 4 * n_temps
    tile_budget = vmem_limit_bytes // 2           # leave half the scoped limit as headroom
    tile_r = min(rows, 1024, max(sublane, tile_budget // max(bytes_per_row, 1)))
    if tile_r < rows:
        tile_r = max(sublane, (tile_r // sublane) * sublane)   # sublane-aligned when tiling
    elif rows >= 2 * sublane:
        # Force >= 2 grid steps so both v7x TensorCores get work (neutral on v5e/v6e).
        half = ((rows // 2 + sublane - 1) // sublane) * sublane
        if half < rows:
            tile_r = half
    return tile_r


def add_norm(x, y, gamma, beta, *, dropout_rate=0.0, training=False,
             eps=1e-5, seed=0):
    """x, y: (batch, seq, hidden). gamma, beta: (hidden,). Returns same shape/dtype as x."""
    assert x.shape == y.shape
    b, s, h = x.shape
    rows = b * s

    # Lane-dense last dim: pad hidden to a multiple of 128 (zeros do not perturb the
    # statistics; padded output lanes are sliced off below). No-op when h % 128 == 0.
    h_pad = ((h + 127) // 128) * 128

    x2 = x.reshape(rows, h)
    y2 = y.reshape(rows, h)
    gamma2 = gamma.astype(jnp.float32).reshape(1, h)
    beta2 = beta.astype(jnp.float32).reshape(1, h)
    if h_pad != h:
        pad = ((0, 0), (0, h_pad - h))
        x2 = jnp.pad(x2, pad)
        y2 = jnp.pad(y2, pad)
        gamma2 = jnp.pad(gamma2, pad)
        beta2 = jnp.pad(beta2, pad)

    seed_arr = jnp.array([seed], dtype=jnp.int32)

    vmem_cap = _vmem_capacity_bytes()
    vmem_limit = (vmem_cap * 3) // 4              # ~48 MiB on v7x, ~96 MiB on v5e/v6e

    sublane = _sublane_multiple(x.dtype)
    tile_r = _choose_tile_rows(
        rows, h_pad, jnp.dtype(x.dtype).itemsize,
        sublane=sublane,
        training_dropout=bool(training) and 0.0 < float(dropout_rate) < 1.0,
        vmem_limit_bytes=vmem_limit,
    )
    grid = (pl.cdiv(rows, tile_r),)

    kernel = functools.partial(
        _add_norm_kernel,
        h_true=int(h),
        dropout_rate=float(dropout_rate),
        training=bool(training),
        eps=float(eps),
    )

    out2 = pl.pallas_call(
        kernel,
        out_shape=jax.ShapeDtypeStruct((rows, h_pad), x.dtype),
        grid_spec=pltpu.PrefetchScalarGridSpec(
            num_scalar_prefetch=1,               # seed -> SMEM, passed to index_maps + kernel
            grid=grid,
            in_specs=[
                pl.BlockSpec((tile_r, h_pad), lambda i, seed: (i, 0)),   # X rows
                pl.BlockSpec((tile_r, h_pad), lambda i, seed: (i, 0)),   # Y rows
                pl.BlockSpec((1, h_pad), lambda i, seed: (0, 0)),        # gamma (broadcast)
                pl.BlockSpec((1, h_pad), lambda i, seed: (0, 0)),        # beta  (broadcast)
            ],
            out_specs=pl.BlockSpec((tile_r, h_pad), lambda i, seed: (i, 0)),
        ),
        compiler_params=pltpu.CompilerParams(
            dimension_semantics=("parallel",),   # shard row tiles across TensorCores
            vmem_limit_bytes=vmem_limit,
        ),
    )(seed_arr, x2, y2, gamma2, beta2)

    if h_pad != h:
        out2 = out2[:, :h]
    return out2.reshape(b, s, h)


if __name__ == "__main__":
    # Small shapes: batch=2, seq=8, hidden=32 ; normalized_shape = hidden = 32.
    batch, seq, hidden = 2, 8, 32
    dropout_rate = 0.1  # module __init__ arg; forward run in eval mode (dropout = identity)

    key = jax.random.PRNGKey(0)
    kx, ky = jax.random.split(key)
    x = jax.random.normal(kx, (batch, seq, hidden), dtype=jnp.float32)
    y = jax.random.normal(ky, (batch, seq, hidden), dtype=jnp.float32)

    # nn.LayerNorm default init: weight = 1, bias = 0 (deterministic).
    gamma = jnp.ones((hidden,), dtype=jnp.float32)
    beta = jnp.zeros((hidden,), dtype=jnp.float32)

    out = add_norm(x, y, gamma, beta, dropout_rate=dropout_rate, training=False)
    out = jax.block_until_ready(out)

    # Reference check (eval mode: dropout is identity).
    z = x + y
    mean = jnp.mean(z, axis=-1, keepdims=True)
    var = jnp.mean((z - mean) ** 2, axis=-1, keepdims=True)
    ref = (z - mean) * jax.lax.rsqrt(var + 1e-5) * gamma + beta
    assert np.allclose(np.asarray(out), np.asarray(ref), atol=1e-5, rtol=1e-5)

    print("KERNEL_OK")
</pallas_src>

<mosaic_0001>
module attributes {stable_mosaic.version = 11 : i64} {
  func.func @_add_norm_kernel(%arg0: i32, %arg1: memref<1xi32, #tpu.memory_space<smem>>, %arg2: memref<8x128xf32, #tpu.memory_space<vmem>>, %arg3: memref<8x128xf32, #tpu.memory_space<vmem>>, %arg4: memref<1x128xf32, #tpu.memory_space<vmem>>, %arg5: memref<1x128xf32, #tpu.memory_space<vmem>>, %arg6: memref<8x128xf32, #tpu.memory_space<vmem>>) attributes {dimension_semantics = [#tpu.dimension_semantics<parallel>], iteration_bounds = array<i64: 2>, scalar_prefetch = 1 : i64, scratch_operands = 0 : i64, tpu.core_type = #tpu.core_type<tc>, window_params = [{transform_indices = @transform_0, window_bounds = array<i64: 8, 128>}, {transform_indices = @transform_1, window_bounds = array<i64: 8, 128>}, {pipeline_mode = #tpu.pipeline_mode<synchronous>, transform_indices = @transform_2, window_bounds = array<i64: 1, 128>}, {pipeline_mode = #tpu.pipeline_mode<synchronous>, transform_indices = @transform_3, window_bounds = array<i64: 1, 128>}, {transform_indices = @transform_4, window_bounds = array<i64: 8, 128>}]} {
    %c0 = arith.constant 0 : index
    %c0_0 = arith.constant 0 : index
    %0 = vector.load %arg2[%c0, %c0_0] : memref<8x128xf32, #tpu.memory_space<vmem>>, vector<8x128xf32>
    %c0_1 = arith.constant 0 : index
    %c0_2 = arith.constant 0 : index
    %1 = vector.load %arg3[%c0_1, %c0_2] : memref<8x128xf32, #tpu.memory_space<vmem>>, vector<8x128xf32>
    %2 = arith.addf %0, %1 : vector<8x128xf32>
    %cst = arith.constant dense<0.000000e+00> : vector<8xf32>
    %3 = vector.multi_reduction <add>, %2, %cst [1] : vector<8x128xf32> to vector<8xf32>
    %4 = vector.shape_cast %3 : vector<8xf32> to vector<8x1xf32>
    %cst_3 = arith.constant 3.125000e-02 : f32
    %5 = vector.broadcast %cst_3 : f32 to vector<8x1xf32>
    %6 = arith.mulf %4, %5 : vector<8x1xf32>
    %7 = arith.mulf %2, %2 : vector<8x128xf32>
    %cst_4 = arith.constant dense<0.000000e+00> : vector<8xf32>
    %8 = vector.multi_reduction <add>, %7, %cst_4 [1] : vector<8x128xf32> to vector<8xf32>
    %9 = vector.shape_cast %8 : vector<8xf32> to vector<8x1xf32>
    %cst_5 = arith.constant 3.125000e-02 : f32
    %10 = vector.broadcast %cst_5 : f32 to vector<8x1xf32>
    %11 = arith.mulf %9, %10 : vector<8x1xf32>
    %12 = arith.mulf %6, %6 : vector<8x1xf32>
    %13 = arith.subf %11, %12 : vector<8x1xf32>
    %cst_6 = arith.constant 0.000000e+00 : f32
    %14 = vector.broadcast %cst_6 : f32 to vector<8x1xf32>
    %15 = arith.maximumf %13, %14 : vector<8x1xf32>
    %cst_7 = arith.constant 9.99999974E-6 : f32
    %16 = vector.broadcast %cst_7 : f32 to vector<8x1xf32>
    %17 = arith.addf %15, %16 : vector<8x1xf32>
    %18 = math.rsqrt %17 : vector<8x1xf32>
    %19 = vector.broadcast %6 : vector<8x1xf32> to vector<8x128xf32>
    %20 = arith.subf %2, %19 : vector<8x128xf32>
    %21 = vector.broadcast %18 : vector<8x1xf32> to vector<8x128xf32>
    %22 = arith.mulf %20, %21 : vector<8x128xf32>
    %c0_8 = arith.constant 0 : index
    %c0_9 = arith.constant 0 : index
    %23 = vector.load %arg4[%c0_8, %c0_9] : memref<1x128xf32, #tpu.memory_space<vmem>>, vector<1x128xf32>
    %24 = vector.broadcast %23 : vector<1x128xf32> to vector<8x128xf32>
    %25 = arith.mulf %22, %24 : vector<8x128xf32>
    %c0_10 = arith.constant 0 : index
    %c0_11 = arith.constant 0 : index
    %26 = vector.load %arg5[%c0_10, %c0_11] : memref<1x128xf32, #tpu.memory_space<vmem>>, vector<1x128xf32>
    %27 = vector.broadcast %26 : vector<1x128xf32> to vector<8x128xf32>
    %28 = arith.addf %25, %27 : vector<8x128xf32>
    %c0_12 = arith.constant 0 : index
    %c0_13 = arith.constant 0 : index
    %29 = vector.load %arg6[%c0_12, %c0_13] : memref<8x128xf32, #tpu.memory_space<vmem>>, vector<8x128xf32>
    tpu.vector_store %arg6[%c0_12, %c0_13], %28 {strides = array<i32>} : memref<8x128xf32, #tpu.memory_space<vmem>>, vector<8x128xf32>,
    return
  }
  func.func @transform_0(%arg0: i32, %arg1: memref<1xi32, #tpu.memory_space<smem>>) -> (i32, i32) {
    %c0_i32 = arith.constant 0 : i32
    %c0_i32_0 = arith.constant 0 : i32
    return %arg0, %c0_i32 : i32, i32
  }
  func.func @transform_1(%arg0: i32, %arg1: memref<1xi32, #tpu.memory_space<smem>>) -> (i32, i32) {
    %c0_i32 = arith.constant 0 : i32
    %c0_i32_0 = arith.constant 0 : i32
    return %arg0, %c0_i32 : i32, i32
  }
  func.func @transform_2(%arg0: i32, %arg1: memref<1xi32, #tpu.memory_space<smem>>) -> (i32, i32) {
    %c0_i32 = arith.constant 0 : i32
    %c0_i32_0 = arith.constant 0 : i32
    %c0_i32_1 = arith.constant 0 : i32
    return %c0_i32, %c0_i32_0 : i32, i32
  }
  func.func @transform_3(%arg0: i32, %arg1: memref<1xi32, #tpu.memory_space<smem>>) -> (i32, i32) {
    %c0_i32 = arith.constant 0 : i32
    %c0_i32_0 = arith.constant 0 : i32
    %c0_i32_1 = arith.constant 0 : i32
    return %c0_i32, %c0_i32_0 : i32, i32
  }
  func.func @transform_4(%arg0: i32, %arg1: memref<1xi32, #tpu.memory_space<smem>>) -> (i32, i32) {
    %c0_i32 = arith.constant 0 : i32
    %c0_i32_0 = arith.constant 0 : i32
    return %arg0, %c0_i32 : i32, i32
  }
}

</mosaic_0001>

<bundles_post_ra>
// kernel: tpu_custom_call.1
= control target key start
LH: loop header
LB: loop body
LE: loop exit
PB: predicated region body
PF: predicated region fallthrough
CT: control target
= control target key end

     0   :  { %s805_s0 = inlined_call_operand.<no memory space> [shape: s32[1], index: 0, kind: input, shape index: {}]   ;;  %s806_s1 = inlined_call_operand.hbm [shape: f32[16,128], index: 1, kind: input, shape index: {}]   ;;  %s807_s2 = inlined_call_operand.hbm [shape: f32[16,128], index: 2, kind: input, shape index: {}]   ;;  %s808_s3 = inlined_call_operand.vmem [shape: f32[1,128], index: 3, kind: input, shape index: {}]   ;;  %s809_s4 = inlined_call_operand.vmem [shape: f32[1,128], index: 4, kind: input, shape index: {}]   ;;  %s810_s5 = inlined_call_operand.hbm [shape: f32[16,128], index: 5, kind: output, shape index: {}]  }
   0x1   :  { %811 = sst [smem:[#allocation13_spill]] %s806_s1 }
   0x2   :  { %11 = vsyncpa [#allocation5], 0 }
   0x3   :  { %13 = vsyncpa [#allocation5 + $0x1], 0 }
   0x4   :  { %14 = vsyncpa [#allocation8], 0 }
   0x5   :  { %16 = vsyncpa [#allocation8 + $0x1], 0 }
   0x6   :  { %17 = vsyncpa [#allocation6], 0 }
   0x7   :  { %19 = vsyncpa [#allocation6 + $0x1], 0  ;;  %s634_s0 = smov 0   ;;  %s636_s18 = smov 0  }
   0x8   :  { %s638_s19 = smov 0   ;;  %s640_s20 = smov 0  }
   0x9 LB: > { %s655_s21 = sadd.s32 4294967295, %s602_s20   ;;  %s402_s22 = sadd.s32 4294967294, %s602_s20   ;;  %s602_s20 = sphi %s640_s20, %s823_s20   ;;  %s598_s19 = sphi %s638_s19, %s822_s19   ;;  %s594_s18 = sphi %s636_s18, %s821_s18   ;;  %s590_s0 = sphi %s634_s0, %s820_s0  }
   0xa   : > { %s659_s23 = sadd.s32 1, %s602_s20   ;;  %s32_s24 = sadd.s32 1, %s598_s19 }
   0xb   : > { %s29_s25 = ssub.s32 %s602_s20, %s659_s23  ;;  %p39_p0 = scmp.ne.s32.totalorder %s598_s19, %s594_s18 }
   0xc   : > { %p30_p1 = scmp.eq.s32.totalorder %s29_s25, 0  ;;  %p40_p2 = scmp.eq.s32.totalorder %s602_s20, 0 }
   0xd   : > { %p45_p3 = scmp.ne.s32.totalorder %s594_s18, %s590_s0  ;;  %p46_p4 = scmp.eq.s32.totalorder %s655_s21, 0 }
   0xe   : > { %s671_s26 = scalar_select %p30_p1, %s598_s19, %s32_s24  }
   0xf   : > { %p673_p5 = por %p40_p2, %p39_p0  ;;  %p677_p6 = por %p46_p4, %p45_p3 }
  0x10   : > { %p137_p7 = scmp.eq.s32.totalorder %s655_s21, 1  ;;  %p143_p8 = scmp.eq.s32.totalorder %s402_s22, 1 }
  0x11   : > { %p434_p10 = scmp.lt.s32.totalorder %s602_s20, 2  ;;  %s693_s6 = sand.u32 1, %s598_s19  }
  0x12   : > { %p684_p11 = por %p137_p7, %p39_p0  ;;  %p688_p12 = por %p143_p8, %p45_p3 }
  0x13   : > { %s406_s7 = sshll.u32 %s602_s20, 3  ;;  %s405_s8 = sshll.u32 %s693_s6, 3 }
  0x14   : > { %s816_s1 = sld [smem:[#allocation13_spill]]  ;;  %s173_s13 = scalar_lea.vmem [#allocation4], %s405_s8 }
  0x15   : > { %s181_s14 = sshll.u32 %s173_s13, 4  ;;  %p702_p13 = pnand %p434_p10, %p673_p5  ;;  %s182_s14 = int_to_ptr.vmem [resolvable:$true] %s181_s14 }
  0x16   : > { %p409_p0 = scmp.ge.s32.totalorder %s602_s20, 1  ;;  %p205_p1 = scmp.lt.s32.totalorder %s602_s20, 3 }
  0x17   : > { %s170_s16 = scalar_lea.sflag [#allocation5], %s693_s6  ;;  %p476_p3 = pneg %p702_p13 }
  0x1a   : > { %s177_s11 = scalar_lea.hbm %s816_s1, %s406_s7  ;;  %s479_s27 = scalar_lea.hbm %s816_s1, 16 }
  0x1b   : > { %s179_s12 = sshll.u32 %s177_s11, 4  ;;  %s180_s12 = int_to_ptr.hbm [resolvable:$true] %s179_s12 }
  0x1c   : > { %s472_s17 = sshra.s32 %s180_s12, 4  ;;  %s473_s17 = int_to_ptr.hbm [resolvable:$true] %s472_s17 }
  0x1d   : > { %s474_s22 = scalar_lea.hbm %s473_s17, 8  ;;  %p480_p5 = scmp.lt.s32.totalorder %s473_s17, %s816_s1 }
  0x1e   : > { %p475_p2 = scmp.ne.s32.totalorder %s473_s17, %s474_s22  ;;  %p481_p8 = scmp.lt.s32.totalorder %s479_s27, %s474_s22 }
  0x20   : > { %p477_p4 = pnand %p476_p3, %p475_p2  ;;  %p482_p10 = por %p481_p8, %p480_p5 }
  0x22   : > { %p478_p7 = pneg %p477_p4 }
  0x24   : > { %p483_p9 = pnand %p482_p10, %p478_p7 }
  0x26   : > { %486 = shalt.err (!%p483_p9)
}
  0x27   : > { %426 = dma.hbm_to_vmem [thread:$0]  (!%p702_p13), %s180_s12, 128, %s182_s14, %s170_s16  }
  0x28   : > { %p726_p2 = pnand %p409_p0, %p205_p1  ;;  %s196_s17 = scalar_lea.hbm %s807_s2, %s406_s7 }
  0x29   : > { %s198_s22 = sshll.u32 %s196_s17, 4  ;;  %s192_s25 = scalar_lea.vmem [#allocation7], %s405_s8  ;;  %s199_s22 = int_to_ptr.hbm [resolvable:$true] %s198_s22 }
  0x2a   : > { %s200_s27 = sshll.u32 %s192_s25, 4  ;;  %s189_s9 = scalar_lea.sflag [#allocation8], %s693_s6  ;;  %s201_s27 = int_to_ptr.vmem [resolvable:$true] %s200_s27 }
  0x2b   : > { %s502_s10 = sshra.s32 %s199_s22, 4  ;;  %s509_s16 = scalar_lea.hbm %s807_s2, 16  ;;  %s503_s10 = int_to_ptr.hbm [resolvable:$true] %s502_s10 }
  0x2c   : > { %s504_s1 = scalar_lea.hbm %s503_s10, 8  ;;  %p510_p4 = scmp.lt.s32.totalorder %s503_s10, %s807_s2 }
  0x2d   : > { %p505_p9 = scmp.ne.s32.totalorder %s503_s10, %s504_s1  ;;  %p511_p7 = scmp.lt.s32.totalorder %s509_s16, %s504_s1 }
  0x2f   : > { %p507_p0 = pnand %p505_p9, %p476_p3  ;;  %p512_p5 = por %p511_p7, %p510_p4 }
  0x31   : > { %p508_p1 = pneg %p507_p0 }
  0x33   : > { %p513_p8 = pnand %p512_p5, %p508_p1 }
  0x35   : > { %516 = shalt.err (!%p513_p8)
}
  0x36   : > { %429 = dma.hbm_to_vmem [thread:$0]  (!%p702_p13), %s199_s22, 128, %s201_s27, %s189_s9  }
  0x37   : > { %209 = sbr.rel (%p726_p2) target bundleno = 225 (0xe1), region = 36  ;;  %s748_s6 = sand.u32 (!%p726_p2), 1, %s594_s18  }
  0x38   : > { %s751_s8 = sshll.u32 (!%p726_p2), %s748_s6, 3  ;;  %s212_s24 = scalar_lea.sflag (!%p726_p2), [#allocation5], %s748_s6 }
  0x39   : > { %s215_s1 = scalar_lea.vmem (!%p726_p2), [#allocation4], %s751_s8 }
  0x3c   : > { %577 = dma.done.wait (%p677_p6), %s212_s24, 128  }
  0x3d   : > { %579 = vsyncadd (%p677_p6), %s212_s24, 4294967168  ;;  %s222_s15 = scalar_lea.sflag [#allocation8], %s748_s6  ;;  %s225_s11 = scalar_lea.vmem [#allocation7], %s751_s8 }
  0x3e   : > { %581 = dma.done.wait (%p677_p6), %s222_s15, 128  }
  0x3f   : > { %583 = vsyncadd (%p677_p6), %s222_s15, 4294967168  ;;  %v256_v0 = vld [vmem:[%s215_s1] sm:$0xff]  ;;  %v257_v1 = vld [vmem:[%s225_s11] sm:$0xff]  ;;  %s414_s28 = sshll.u32 %s655_s21, 3  ;;  %s255_s21 = scalar_lea.vmem [#allocation9], %s751_s8 }
  0x40   : > { %v258_v2 = vadd.f32 %v257_v1, %v256_v0  ;;  %v468_v19 = vld [vmem:[%s808_s3] ss:$0 sm:$0xff]  ;;  %s304_s9 = scalar_lea.hbm %s810_s5, %s414_s28  ;;  %s306_s14 = sshll.u32 %s255_s21, 4  ;;  %s307_s14 = int_to_ptr.vmem [resolvable:$true] %s306_s14 }
  0x41   : > { %v469_v22 = vld [vmem:[%s809_s4] ss:$0 sm:$0xff]  ;;  %s308_s16 = sshll.u32 %s304_s9, 4  ;;  %s294_s13 = scalar_lea.sflag [#allocation6], %s748_s6  ;;  %s309_s16 = int_to_ptr.hbm [resolvable:$true] %s308_s16 }
  0x42   : > { %259 = vadd.xlane.f32.xlu0 %v258_v2  ;;  %v262_v3 = vmul.f32 %v258_v2, %v258_v2  ;;  %s546_s7 = sshra.s32 %s309_s16, 4  ;;  %s552_s11 = scalar_lea.hbm %s810_s5, 16  ;;  %s547_s7 = int_to_ptr.hbm [resolvable:$true] %s546_s7 }
  0x43   : > { %s548_s24 = scalar_lea.hbm %s547_s7, 8  ;;  %p553_p10 = scmp.lt.s32.totalorder %s547_s7, %s810_s5 }
  0x44   : > { %p549_p6 = scmp.ne.s32.totalorder %s547_s7, %s548_s24  ;;  %p554_p2 = scmp.lt.s32.totalorder %s552_s11, %s548_s24 }
  0x46   : > { %p550_p13 = pnand %p549_p6, %p684_p11  ;;  %p555_p9 = por %p554_p2, %p553_p10 }
  0x48   : > { %p551_p3 = pneg %p550_p13 }
  0x4a   : > { %263 = vadd.xlane.f32.xlu0 %v262_v3  ;;  %p556_p0 = pnand %p555_p9, %p551_p3 }
  0xb5   : > { %v260_v4 = vpop.xlane.xlu0 %259 }
  0xb6   : > { %v261_v5 = vmul.f32 0.03125, %v260_v4 }
  0xb8   : > { %v266_v7 = vmul.f32 %v261_v5, %v261_v5  ;;  %v280_v18 = vsub.f32 %v258_v2, %v261_v5 }
  0xbd   : > { %v264_v6 = vpop.xlane.xlu0 %263 }
  0xbe   : > { %v265_v8 = vmul.f32 0.03125, %v264_v6 }
  0xc0   : > { %v267_v9 = vsub.f32 %v265_v8, %v266_v7 }
  0xc2   : > { %v268_v10 = vmax.f32 %v267_v9, 0.0 }
  0xc4   : > { %v269_v11 = vadd.f32 1e-05, %v268_v10 }
  0xc6   : > { %470 = vrsqrt.f32 %v269_v11  ;;  %vm276_vm1 = vweird.f32 %v269_v11 }
  0xcc   : > { %v471_v12 = vpop.eup %470 }
  0xcd   : > { %v271_v13 = vmul.f32 %v471_v12, %v269_v11  ;;  %vm277_vm0 = vweird.f32 %v471_v12 }
  0xce   : > { %vm278_vm2 = vmor %vm276_vm1, %vm277_vm0 }
  0xcf   : > { %v272_v14 = vmul.f32 %v471_v12, %v271_v13 }
  0xd1   : > { %v273_v15 = vmul.f32 0.5, %v272_v14 }
  0xd3   : > { %v274_v16 = vsub.f32 1.5, %v273_v15 }
  0xd5   : > { %v275_v17 = vmul.f32 %v471_v12, %v274_v16 }
  0xd7   : > { %v279_v20 = vsel %vm278_vm2, %v471_v12, %v275_v17 }
  0xd8   : > { %v281_v21 = vmul.f32 %v280_v18, %v279_v20 }
  0xda   : > { %v286_v23 = vmul.f32 %v468_v19, %v281_v21 }
  0xdc   : > { %v291_v24 = vadd.f32 %v469_v22, %v286_v23 }
  0xde   : > { %292 = vst [vmem:[%s255_s21] sm:$0xff] %v291_v24 }
  0xdf   : > { %559 = shalt.err (!%p556_p0)
}
  0xe0   : > { %421 = dma.vmem_to_hbm [thread:$0]  (%p684_p11), %s307_s14, 128, %s309_s16, %s294_s13  }
  0xe1 PF: > { %s320_s6 = sand.u32 1, %s590_s0   ;;  %p819_p1 = scmp.ge.s32.totalorder %s602_s20, 2 }
  0xe2   : > { %s321_s17 = scalar_lea.sflag [#allocation6], %s320_s6 }
  0xe3   : > { %p431_p4 = pnand %p819_p1, %p688_p12 }
  0xe5   : > { %p432_p7 = pneg %p431_p4 }
  0xe7   : > { %585 = dma.done.wait (%p432_p7), %s321_s17, 128  }
  0xe8   : > { %587 = vsyncadd (%p432_p7), %s321_s17, 4294967168  ;;  %p22_p5 = scmp.ge.s32.totalorder %s659_s23, 4   ;;  %s820_s0 = smov %s594_s18 }
  0xe9   : > { %s821_s18 = smov %s598_s19  ;;  %s822_s19 = smov %s671_s26 }
  0xea   : > { %s823_s20 = smov %s659_s23  ;;  %24 = sbr.rel (!%p22_p5) target bundleno = 9 (0x9), region = 94 }
  0xef   :  { %327 = vsyncpa [#allocation5], 1 }
  0xf0   :  { %329 = vsyncpa [#allocation5 + $0x1], 1 }
  0xf1   :  { %330 = vsyncpa [#allocation8], 1 }
  0xf2   :  { %332 = vsyncpa [#allocation8 + $0x1], 1 }
  0xf3   :  { %333 = vsyncpa [#allocation6], 1 }
  0xf4   :  { %335 = vsyncpa [#allocation6 + $0x1], 1 }

</bundles_post_ra>
